<compile_context>
chip_gen: v5e
topology: v5e:2x2
jax: 0.10.0
libtpu: 0.0.40
codegen_flags: <defaults>
</compile_context>

<pallas_src>
import functools

import jax
import jax.numpy as jnp
from jax import lax
from jax.experimental import pallas as pl
from jax.experimental.pallas import tpu as pltpu


_ROW_TILE_TARGET = 512     # target M rows (TH * W) for the per-tile im2col matmul
_GN_EPS = 1e-5

_vmem_limit_cache = [None]


def _vmem_limit_bytes():
    """Generation-aware scoped-VMEM budget (96 MiB on 128-MiB parts, 48 MiB on v7x)."""
    if _vmem_limit_cache[0] is None:
        try:
            cap = int(pltpu.get_tpu_info().vmem_capacity_bytes)
        except Exception:
            cap = 128 * 1024 * 1024
        _vmem_limit_cache[0] = int(min(100 * 1024 * 1024, (cap * 3) // 4))
    return _vmem_limit_cache[0]


def _pad128(c):
    return ((c + 127) // 128) * 128


def _row_tile(h, w, target=_ROW_TILE_TARGET):
    """Largest divisor of h whose row tile (th*w rows of the im2col M dim) <= target."""
    th = 1
    for cand in range(1, h + 1):
        if h % cand == 0 and cand * w <= target:
            th = cand
    return th


# --------------------------------------------------------------------------
# Pallas kernels
# --------------------------------------------------------------------------

def _gn_stats_kernel(x_ref, o_ref):
    """Streaming GroupNorm statistics: per-channel sum / sum-of-squares,
    accumulated across the row-tile grid axis into rows 0/1 of o_ref."""
    t = pl.program_id(1)
    _, th, w, c = x_ref.shape
    xf = x_ref[0].reshape(th * w, c)
    s = jnp.sum(xf, axis=0, keepdims=True)           # (1, C)
    sq = jnp.sum(xf * xf, axis=0, keepdims=True)     # (1, C)
    acc = jnp.concatenate([s, sq], axis=0)           # (2, C)

    @pl.when(t == 0)
    def _():
        o_ref[0, 0:2, :] = acc
        o_ref[0, 2:8, :] = jnp.zeros((6, c), jnp.float32)

    @pl.when(t > 0)
    def _():
        o_ref[0, 0:2, :] = o_ref[0, 0:2, :] + acc
    # TODO(synk): at very large H*W, accumulate the sums in chunks (or Welford)
    # to tighten the E[x^2]-E[x]^2 variance; plain f32 sums are fine here.


def _norm_conv_kernel(*refs, KH, KW, has_gn, has_res):
    """Fused [per-channel affine GN -> SiLU ->] 'same' stride-1 Conv2d [+ residual].

    Row-tiled: each grid step (b, t) produces output rows [t*TH, (t+1)*TH).
    The conv is KH accumulated MXU matmuls with contraction K = KW*Cin (one
    kernel row packed at a time), operands in bf16, accumulation in f32.
    """
    it = iter(refs)
    x_ref = next(it)                        # (1, H, W, Cin)  f32, full image (resident)
    ss_ref = next(it) if has_gn else None   # (1, 8, Cin): row0 = scale, row1 = shift
    w_ref = next(it)                        # (KH, KW*Cin, Cout) bf16
    b_ref = next(it)                        # (1, Cout) f32
    r_ref = next(it) if has_res else None   # (1, TH, W, Cout) f32 row tile
    o_ref = next(it)                        # (1, TH, W, Cout) f32 row tile
    pad_ref = next(it)                      # VMEM (TH+2ph, W+2pw, Cin) bf16

    _, H, W, Cin = x_ref.shape
    TH = o_ref.shape[1]
    Cout = o_ref.shape[-1]
    ph, pw = (KH - 1) // 2, (KW - 1) // 2
    t = pl.program_id(1)
    nt = pl.num_programs(1)
    row0 = t * TH

    if has_gn:
        scale = ss_ref[0, 0:1, :]           # (1, Cin) folded gamma*rsqrt(var+eps)
        shift = ss_ref[0, 1:2, :]           # (1, Cin) folded beta - mean*scale

        def activate(v):                    # v: (R, W, Cin) f32 -> bf16
            v = v * scale + shift
            return (v * jax.nn.sigmoid(v)).astype(jnp.bfloat16)
    else:
        def activate(v):
            return v.astype(jnp.bfloat16)

    # interior rows of the padded tile (halo strips handled below; the interior
    # write never touches them, so no full-buffer zeroing is needed)
    pad_ref[ph:ph + TH, pw:pw + W, :] = activate(x_ref[0, pl.ds(row0, TH), :, :])

    if ph > 0:
        # top halo: previous tile's last rows (zeros at the image top)
        top = activate(x_ref[0, pl.ds(jnp.maximum(row0 - ph, 0), ph), :, :])
        pad_ref[0:ph, pw:pw + W, :] = jnp.where(t > 0, top, jnp.zeros_like(top))
        # bottom halo: next tile's first rows (zeros at the image bottom)
        bot_start = jnp.maximum(jnp.minimum(row0 + TH, H - ph), 0)
        bot = activate(x_ref[0, pl.ds(bot_start, ph), :, :])
        pad_ref[ph + TH:, pw:pw + W, :] = jnp.where(t < nt - 1, bot,
                                                    jnp.zeros_like(bot))
    if pw > 0:
        # zero only the left/right halo column strips (tiny stores)
        strip = jnp.zeros((TH + 2 * ph, pw, Cin), jnp.bfloat16)
        pad_ref[:, 0:pw, :] = strip
        pad_ref[:, pw + W:, :] = strip

    # conv: one kernel row at a time, K = KW*Cin, accumulate KH matmuls (f32)
    y = None
    for kh in range(KH):
        taps = [pad_ref[kh:kh + TH, kw:kw + W, :] for kw in range(KW)]
        slab = taps[0] if KW == 1 else jnp.concatenate(taps, axis=-1)
        slab = slab.reshape(TH * W, KW * Cin)
        part = jnp.dot(slab, w_ref[kh], preferred_element_type=jnp.float32)
        y = part if y is None else y + part
    y = y + b_ref[...]
    if has_res:
        y = y + r_ref[0].reshape(TH * W, Cout)
    o_ref[0] = y.reshape(TH, W, Cout)


def _upsample_kernel(x_ref, w_ref, b_ref, o_ref, *, fh):
    """ConvTranspose2d with kernel_size == stride == factor, depth-to-space fused:
    one bf16 matmul per output sub-row index i, written into a (1,TH,fh,W,fw*C)
    block whose wrapper reshape to (TH*fh, W*fw, C) is a free metadata merge."""
    _, TH, W, Cin = x_ref.shape
    x = x_ref[0].reshape(TH * W, Cin).astype(jnp.bfloat16)
    for i in range(fh):
        y = jnp.dot(x, w_ref[i], preferred_element_type=jnp.float32) + b_ref[...]
        o_ref[0, :, i, :, :] = y.reshape(TH, W, y.shape[-1])


# --------------------------------------------------------------------------
# pallas_call wrappers
# --------------------------------------------------------------------------

def gn_stats(x):
    """Per-channel sum / sumsq of an NHWC activation -> (B, 8, C) (rows 0/1 used)."""
    B, H, W, C = x.shape
    th = _row_tile(H, W)
    nt = H // th
    return pl.pallas_call(
        _gn_stats_kernel,
        out_shape=jax.ShapeDtypeStruct((B, 8, C), jnp.float32),
        grid=(B, nt),
        in_specs=[pl.BlockSpec((1, th, W, C), lambda bi, ti: (bi, ti, 0, 0))],
        out_specs=pl.BlockSpec((1, 8, C), lambda bi, ti: (bi, 0, 0)),
        compiler_params=pltpu.CompilerParams(
            dimension_semantics=("parallel", "arbitrary"),
            vmem_limit_bytes=_vmem_limit_bytes()),
    )(x)


def _fold_gn_affine(stats, gamma, beta, num_groups, real_c, hw, cpad, eps=_GN_EPS):
    """Fold GroupNorm stats + (gamma, beta) into a per-channel (scale, shift) pair."""
    assert real_c % num_groups == 0, "channels must be divisible by num_groups"
    B = stats.shape[0]
    G, CG = num_groups, real_c // num_groups
    s = stats[:, 0, :real_c].reshape(B, G, CG).sum(-1)
    sq = stats[:, 1, :real_c].reshape(B, G, CG).sum(-1)
    n = float(hw * CG)
    mean = s / n
    var = jnp.maximum(sq / n - mean * mean, 0.0)
    inv = lax.rsqrt(var + eps)
    mean_c = jnp.repeat(mean, CG, axis=-1)               # (B, real_c)
    inv_c = jnp.repeat(inv, CG, axis=-1)
    scale = inv_c * gamma[None, :real_c]
    shift = beta[None, :real_c] - mean_c * scale
    out = jnp.zeros((B, 8, cpad), jnp.float32)           # padded channels: scale=shift=0
    out = out.at[:, 0, :real_c].set(scale)
    out = out.at[:, 1, :real_c].set(shift)
    return out


def gn_silu_conv(x, w, b, *, stats_scale_shift=None, residual=None):
    """Fused (optional GN-affine+SiLU) -> 'same' stride-1 Conv2d -> (optional +res).

    x: (B,H,W,Cin_pad) f32, w: (KH,KW,Cin_pad,Cout_pad) f32 (zero padded),
    b: (Cout_pad,) f32. Returns (B,H,W,Cout_pad) f32.
    """
    # TODO(synk): stride > 1 / even-kernel conv paths not implemented (config
    # uses odd kernels with stride (1,1) everywhere).
    B, H, W, Cin = x.shape
    KH, KW, _, Cout = w.shape
    ph, pw = (KH - 1) // 2, (KW - 1) // 2
    th = _row_tile(H, W)
    if th < max(ph, 1):
        th = H
    nt = H // th
    has_gn = stats_scale_shift is not None
    has_res = residual is not None

    wk = w.reshape(KH, KW * Cin, Cout).astype(jnp.bfloat16)
    b2 = b.reshape(1, Cout).astype(jnp.float32)

    kernel = functools.partial(_norm_conv_kernel, KH=KH, KW=KW,
                               has_gn=has_gn, has_res=has_res)

    # TODO(synk): at very large resolutions the full-image resident input block
    # should become a manual halo DMA per row tile to bound VMEM further.
    in_specs = [pl.BlockSpec((1, H, W, Cin), lambda bi, ti: (bi, 0, 0, 0))]
    args = [x]
    if has_gn:
        in_specs.append(pl.BlockSpec((1, 8, Cin), lambda bi, ti: (bi, 0, 0)))
        args.append(stats_scale_shift)
    in_specs += [pl.BlockSpec((KH, KW * Cin, Cout), lambda bi, ti: (0, 0, 0)),
                 pl.BlockSpec((1, Cout), lambda bi, ti: (0, 0))]
    args += [wk, b2]
    if has_res:
        in_specs.append(pl.BlockSpec((1, th, W, Cout), lambda bi, ti: (bi, ti, 0, 0)))
        args.append(residual)

    return pl.pallas_call(
        kernel,
        out_shape=jax.ShapeDtypeStruct((B, H, W, Cout), jnp.float32),
        grid=(B, nt),
        in_specs=in_specs,
        out_specs=pl.BlockSpec((1, th, W, Cout), lambda bi, ti: (bi, ti, 0, 0)),
        scratch_shapes=[pltpu.VMEM((th + 2 * ph, W + 2 * pw, Cin), jnp.bfloat16)],
        compiler_params=pltpu.CompilerParams(
            dimension_semantics=("parallel", "parallel"),
            vmem_limit_bytes=_vmem_limit_bytes()),
    )(*args)


def conv_transpose_upsample(x, w, b, factor, cout_pad):
    """ConvTranspose2d(kernel_size=factor, stride=factor) with fused depth-to-space.

    x: (B,H,W,Cin_pad); w: (Cin_real, fh, fw, Cout_real); returns (B,H*fh,W*fw,Cout_pad).
    """
    B, H, W, Cinp = x.shape
    fh, fw = factor
    cin_real, _, _, cout_real = w.shape

    # weight -> (fh, Cin_pad, fw*Cout_pad), bias tiled per sub-pixel column
    wp = jnp.zeros((fh, Cinp, fw, cout_pad), jnp.float32)
    wp = wp.at[:, :cin_real, :, :cout_real].set(jnp.transpose(w, (1, 0, 2, 3)))
    wp = wp.reshape(fh, Cinp, fw * cout_pad).astype(jnp.bfloat16)
    bp = jnp.zeros((fw, cout_pad), jnp.float32).at[:, :cout_real].set(b[None, :])
    bp = bp.reshape(1, fw * cout_pad)

    th = _row_tile(H, W)
    nt = H // th

    y5 = pl.pallas_call(
        functools.partial(_upsample_kernel, fh=fh),
        out_shape=jax.ShapeDtypeStruct((B, H, fh, W, fw * cout_pad), jnp.float32),
        grid=(B, nt),
        in_specs=[
            pl.BlockSpec((1, th, W, Cinp), lambda bi, ti: (bi, ti, 0, 0)),
            pl.BlockSpec((fh, Cinp, fw * cout_pad), lambda bi, ti: (0, 0, 0)),
            pl.BlockSpec((1, fw * cout_pad), lambda bi, ti: (0, 0)),
        ],
        out_specs=pl.BlockSpec((1, th, fh, W, fw * cout_pad),
                               lambda bi, ti: (bi, ti, 0, 0, 0)),
        compiler_params=pltpu.CompilerParams(
            dimension_semantics=("parallel", "parallel"),
            vmem_limit_bytes=_vmem_limit_bytes()),
    )(x, wp, bp)
    # (B,H,fh,W,fw*C) -> (B,H*fh,W*fw,C): adjacent-dim merge = metadata-only reshape.
    return y5.reshape(B, H * fh, W * fw, cout_pad)


def _pad_conv_params(w, b, cin_pad, cout_pad):
    KH, KW, cin, cout = w.shape
    wp = jnp.zeros((KH, KW, cin_pad, cout_pad), jnp.float32).at[:, :, :cin, :cout].set(w)
    bp = jnp.zeros((cout_pad,), jnp.float32).at[:cout].set(b)
    return wp, bp


# --------------------------------------------------------------------------
# Parameter init (deterministic, synthetic) + forward pass (mirrors nn.Module)
# --------------------------------------------------------------------------

def _init_conv(key, kh, kw, cin, cout, scale=0.15):
    k1, k2 = jax.random.split(key)
    w = scale * jax.random.normal(k1, (kh, kw, cin, cout), jnp.float32)
    b = 0.05 * jax.random.normal(k2, (cout,), jnp.float32)
    return w, b


def _init_gn(key, c):
    k1, k2 = jax.random.split(key)
    gamma = 1.0 + 0.1 * jax.random.normal(k1, (c,), jnp.float32)
    beta = 0.1 * jax.random.normal(k2, (c,), jnp.float32)
    return gamma, beta


def init_decoder_params(key, out_channels, channels, multipliers, factors,
                        num_blocks, kernel_sizes, strides, resnet_groups):
    params = {"resnet_groups": resnet_groups, "decoder_blocks": []}
    keys = jax.random.split(key, 128)
    ki = 0
    for i, (kernel, stride, blocks, factor) in enumerate(
            zip(kernel_sizes[:-1], strides[:-1], num_blocks[:-1], factors[:-1])):
        cin = channels * multipliers[i]
        cout = channels * multipliers[i + 1]
        fh, fw = factor
        up_w = 0.15 * jax.random.normal(keys[ki], (cin, fh, fw, cout), jnp.float32); ki += 1
        up_b = 0.05 * jax.random.normal(keys[ki], (cout,), jnp.float32); ki += 1
        res_blocks = []
        for _ in range(blocks):
            b1w, b1b = _init_conv(keys[ki], kernel[0], kernel[1], cout, cout); ki += 1
            g1g, g1bt = _init_gn(keys[ki], cout); ki += 1
            b2w, b2b = _init_conv(keys[ki], 3, 3, cout, cout); ki += 1
            g2g, g2bt = _init_gn(keys[ki], cout); ki += 1
            res_blocks.append({
                "block1": {"gn_gamma": g1g, "gn_beta": g1bt, "w": b1w, "b": b1b},
                "block2": {"gn_gamma": g2g, "gn_beta": g2bt, "w": b2w, "b": b2b},
            })
        params["decoder_blocks"].append(
            {"up_w": up_w, "up_b": up_b, "factor": factor, "blocks": res_blocks})
    kf = kernel_sizes[-1]
    cin = channels * multipliers[-1]
    tw, tb = _init_conv(keys[ki], kf[0], kf[1], cin, out_channels); ki += 1
    params["to_out"] = {"w": tw, "b": tb}
    return params
    # TODO(synk): `state` pickle checkpoint loading omitted (no file I/O allowed).


def cnn_decoder_forward(x_nchw, params):
    x = jnp.transpose(x_nchw, (0, 2, 3, 1)).astype(jnp.float32)      # NCHW -> NHWC
    B, H0, W0, C0 = x.shape
    x = jnp.pad(x, ((0, 0), (0, 0), (0, 0), (0, _pad128(C0) - C0)))  # lane-dense channels
    G = params["resnet_groups"]
    for bp in params["decoder_blocks"]:
        cout_real = bp["up_w"].shape[-1]
        cpad = _pad128(cout_real)
        x = conv_transpose_upsample(x, bp["up_w"], bp["up_b"], bp["factor"], cpad)
        Hc, Wc = x.shape[1], x.shape[2]
        for rp in bp["blocks"]:
            # block1: GN -> SiLU -> conv (stats pass + fused normalize/conv pass)
            ss1 = _fold_gn_affine(gn_stats(x), rp["block1"]["gn_gamma"],
                                  rp["block1"]["gn_beta"], G, cout_real, Hc * Wc, cpad)
            w1, b1 = _pad_conv_params(rp["block1"]["w"], rp["block1"]["b"], cpad, cpad)
            h = gn_silu_conv(x, w1, b1, stats_scale_shift=ss1)
            # block2: GN -> SiLU -> conv, residual add fused (to_out == Identity here)
            ss2 = _fold_gn_affine(gn_stats(h), rp["block2"]["gn_gamma"],
                                  rp["block2"]["gn_beta"], G, cout_real, Hc * Wc, cpad)
            w2, b2 = _pad_conv_params(rp["block2"]["w"], rp["block2"]["b"], cpad, cpad)
            x = gn_silu_conv(h, w2, b2, stats_scale_shift=ss2, residual=x)
    tw, tb = params["to_out"]["w"], params["to_out"]["b"]
    out_ch = tw.shape[-1]
    twp, tbp = _pad_conv_params(tw, tb, x.shape[-1], _pad128(out_ch))
    y = gn_silu_conv(x, twp, tbp)                                    # no GN/SiLU on to_out
    y = y[..., :out_ch]
    return jnp.transpose(y, (0, 3, 1, 2))                            # NHWC -> NCHW


# --------------------------------------------------------------------------
# Pure-JAX reference (for correctness check)
# --------------------------------------------------------------------------

def _ref_groupnorm_silu(x, gamma, beta, G, eps=_GN_EPS):
    B, H, W, C = x.shape
    xg = x.reshape(B, H, W, G, C // G)
    mean = jnp.mean(xg, axis=(1, 2, 4), keepdims=True)
    var = jnp.mean((xg - mean) ** 2, axis=(1, 2, 4), keepdims=True)
    xn = ((xg - mean) / jnp.sqrt(var + eps)).reshape(B, H, W, C)
    xn = xn * gamma + beta
    return xn * jax.nn.sigmoid(xn)


def _ref_conv2d(x, w, b):
    KH, KW = w.shape[0], w.shape[1]
    ph, pw = (KH - 1) // 2, (KW - 1) // 2
    y = lax.conv_general_dilated(x, w, (1, 1), ((ph, ph), (pw, pw)),
                                 dimension_numbers=("NHWC", "HWIO", "NHWC"),
                                 precision=lax.Precision.HIGHEST)
    return y + b


def _ref_upsample(x, w, b, factor):
    B, H, W, Cin = x.shape
    fh, fw = factor
    Cout = w.shape[-1]
    y = jnp.einsum("bhwc,cijo->bhiwjo", x, w, precision=lax.Precision.HIGHEST)
    return y.reshape(B, H * fh, W * fw, Cout) + b


def cnn_decoder_ref(x_nchw, params):
    x = jnp.transpose(x_nchw, (0, 2, 3, 1)).astype(jnp.float32)
    G = params["resnet_groups"]
    for bp in params["decoder_blocks"]:
        x = _ref_upsample(x, bp["up_w"], bp["up_b"], bp["factor"])
        for rp in bp["blocks"]:
            h = _ref_conv2d(_ref_groupnorm_silu(x, rp["block1"]["gn_gamma"],
                                                rp["block1"]["gn_beta"], G),
                            rp["block1"]["w"], rp["block1"]["b"])
            h = _ref_conv2d(_ref_groupnorm_silu(h, rp["block2"]["gn_gamma"],
                                                rp["block2"]["gn_beta"], G),
                            rp["block2"]["w"], rp["block2"]["b"])
            x = h + x
    x = _ref_conv2d(x, params["to_out"]["w"], params["to_out"]["b"])
    return jnp.transpose(x, (0, 3, 1, 2))


# --------------------------------------------------------------------------
# Demo
# --------------------------------------------------------------------------

if __name__ == "__main__":
    key = jax.random.PRNGKey(0)
    kx, kp = jax.random.split(key)

    # Small decoder config consistent with the module's constructor:
    out_channels = 3
    channels = 8
    multipliers = [4, 2, 1]
    factors = [(2, 2), (2, 2), (2, 2)]
    num_blocks = [1, 1, 1]
    kernel_sizes = [(3, 3), (3, 3), (3, 3)]
    strides = [(1, 1), (1, 1), (1, 1)]
    resnet_groups = 8

    params = init_decoder_params(kp, out_channels, channels, multipliers, factors,
                                 num_blocks, kernel_sizes, strides, resnet_groups)

    B, H, W = 2, 8, 8
    x = jax.random.normal(kx, (B, channels * multipliers[0], H, W), jnp.float32)

    y = jax.block_until_ready(cnn_decoder_forward(x, params))
    y_ref = jax.block_until_ready(cnn_decoder_ref(x, params))

    assert y.shape == (B, out_channels, H * 4, W * 4), y.shape
    err = float(jnp.max(jnp.abs(y - y_ref)))
    # bf16 MXU operands -> slightly looser tolerance than pure-f32 (outputs are O(1)).
    assert err < 1.5e-1, f"max abs diff too large: {err}"
    print("KERNEL_OK")
</pallas_src>

<mosaic_0001>
module attributes {stable_mosaic.version = 11 : i64} {
  func.func @_upsample_kernel(%arg0: i32, %arg1: i32, %arg2: memref<1x8x8x128xf32, #tpu.memory_space<vmem>>, %arg3: memref<2x128x256xbf16, #tpu.memory_space<vmem>>, %arg4: memref<1x256xf32, #tpu.memory_space<vmem>>, %arg5: memref<1x8x2x8x256xf32, #tpu.memory_space<vmem>>) attributes {dimension_semantics = [#tpu.dimension_semantics<parallel>, #tpu.dimension_semantics<parallel>], iteration_bounds = array<i64: 2, 1>, scalar_prefetch = 0 : i64, scratch_operands = 0 : i64, tpu.core_type = #tpu.core_type<tc>, window_params = [{transform_indices = @transform_0, window_bounds = array<i64: 1, 8, 8, 128>}, {pipeline_mode = #tpu.pipeline_mode<synchronous>, transform_indices = @transform_1, window_bounds = array<i64: 2, 128, 256>}, {pipeline_mode = #tpu.pipeline_mode<synchronous>, transform_indices = @transform_2, window_bounds = array<i64: 1, 256>}, {transform_indices = @transform_3, window_bounds = array<i64: 1, 8, 2, 8, 256>}]} {
    %c0 = arith.constant 0 : index
    %c0_0 = arith.constant 0 : index
    %c0_1 = arith.constant 0 : index
    %c0_2 = arith.constant 0 : index
    %0 = vector.load %arg2[%c0, %c0_0, %c0_1, %c0_2] : memref<1x8x8x128xf32, #tpu.memory_space<vmem>>, vector<1x8x8x128xf32>
    %1 = vector.shape_cast %0 : vector<1x8x8x128xf32> to vector<8x8x128xf32>
    %2 = vector.shape_cast %1 : vector<8x8x128xf32> to vector<64x128xf32>
    %3 = arith.truncf %2 : vector<64x128xf32> to vector<64x128xbf16>
    %c0_3 = arith.constant 0 : index
    %c0_4 = arith.constant 0 : index
    %c0_5 = arith.constant 0 : index
    %4 = vector.load %arg3[%c0_3, %c0_4, %c0_5] : memref<2x128x256xbf16, #tpu.memory_space<vmem>>, vector<1x128x256xbf16>
    %5 = vector.shape_cast %4 : vector<1x128x256xbf16> to vector<128x256xbf16>
    %cst = arith.constant dense<0.000000e+00> : vector<64x256xf32>
    %6 = tpu.matmul %3, %5, %cst {dimension_numbers = #tpu.dot_dimension_numbers<[1], [0], [0], [1], [0, 0, 1, 1], [], []>} : vector<64x128xbf16>, vector<128x256xbf16>, vector<64x256xf32> -> vector<64x256xf32>
    %c0_6 = arith.constant 0 : index
    %c0_7 = arith.constant 0 : index
    %7 = vector.load %arg4[%c0_6, %c0_7] : memref<1x256xf32, #tpu.memory_space<vmem>>, vector<1x256xf32>
    %8 = vector.broadcast %7 : vector<1x256xf32> to vector<64x256xf32>
    %9 = arith.addf %6, %8 : vector<64x256xf32>
    %10 = vector.shape_cast %9 : vector<64x256xf32> to vector<8x8x256xf32>
    %c0_8 = arith.constant 0 : index
    %c0_9 = arith.constant 0 : index
    %c0_10 = arith.constant 0 : index
    %c0_11 = arith.constant 0 : index
    %c0_12 = arith.constant 0 : index
    %11 = vector.load %arg5[%c0_8, %c0_9, %c0_10, %c0_11, %c0_12] : memref<1x8x2x8x256xf32, #tpu.memory_space<vmem>>, vector<1x8x1x8x256xf32>
    %12 = vector.shape_cast %11 : vector<1x8x1x8x256xf32> to vector<8x8x256xf32>
    %13 = vector.shape_cast %10 : vector<8x8x256xf32> to vector<1x8x1x8x256xf32>
    tpu.vector_store %arg5[%c0_8, %c0_9, %c0_10, %c0_11, %c0_12], %13 {strides = array<i32>} : memref<1x8x2x8x256xf32, #tpu.memory_space<vmem>>, vector<1x8x1x8x256xf32>,
    %c1 = arith.constant 1 : index
    %c0_13 = arith.constant 0 : index
    %c0_14 = arith.constant 0 : index
    %14 = vector.load %arg3[%c1, %c0_13, %c0_14] : memref<2x128x256xbf16, #tpu.memory_space<vmem>>, vector<1x128x256xbf16>
    %15 = vector.shape_cast %14 : vector<1x128x256xbf16> to vector<128x256xbf16>
    %cst_15 = arith.constant dense<0.000000e+00> : vector<64x256xf32>
    %16 = tpu.matmul %3, %15, %cst_15 {dimension_numbers = #tpu.dot_dimension_numbers<[1], [0], [0], [1], [0, 0, 1, 1], [], []>} : vector<64x128xbf16>, vector<128x256xbf16>, vector<64x256xf32> -> vector<64x256xf32>
    %c0_16 = arith.constant 0 : index
    %c0_17 = arith.constant 0 : index
    %17 = vector.load %arg4[%c0_16, %c0_17] : memref<1x256xf32, #tpu.memory_space<vmem>>, vector<1x256xf32>
    %18 = vector.broadcast %17 : vector<1x256xf32> to vector<64x256xf32>
    %19 = arith.addf %16, %18 : vector<64x256xf32>
    %20 = vector.shape_cast %19 : vector<64x256xf32> to vector<8x8x256xf32>
    %c0_18 = arith.constant 0 : index
    %c0_19 = arith.constant 0 : index
    %c1_20 = arith.constant 1 : index
    %c0_21 = arith.constant 0 : index
    %c0_22 = arith.constant 0 : index
    %21 = vector.load %arg5[%c0_18, %c0_19, %c1_20, %c0_21, %c0_22] : memref<1x8x2x8x256xf32, #tpu.memory_space<vmem>>, vector<1x8x1x8x256xf32>
    %22 = vector.shape_cast %21 : vector<1x8x1x8x256xf32> to vector<8x8x256xf32>
    %23 = vector.shape_cast %20 : vector<8x8x256xf32> to vector<1x8x1x8x256xf32>
    tpu.vector_store %arg5[%c0_18, %c0_19, %c1_20, %c0_21, %c0_22], %23 {strides = array<i32>} : memref<1x8x2x8x256xf32, #tpu.memory_space<vmem>>, vector<1x8x1x8x256xf32>,
    return
  }
  func.func @transform_0(%arg0: i32, %arg1: i32) -> (i32, i32, i32, i32) {
    %c0_i32 = arith.constant 0 : i32
    %c0_i32_0 = arith.constant 0 : i32
    %c0_i32_1 = arith.constant 0 : i32
    return %arg0, %arg1, %c0_i32, %c0_i32_0 : i32, i32, i32, i32
  }
  func.func @transform_1(%arg0: i32, %arg1: i32) -> (i32, i32, i32) {
    %c0_i32 = arith.constant 0 : i32
    %c0_i32_0 = arith.constant 0 : i32
    %c0_i32_1 = arith.constant 0 : i32
    %c0_i32_2 = arith.constant 0 : i32
    return %c0_i32, %c0_i32_0, %c0_i32_1 : i32, i32, i32
  }
  func.func @transform_2(%arg0: i32, %arg1: i32) -> (i32, i32) {
    %c0_i32 = arith.constant 0 : i32
    %c0_i32_0 = arith.constant 0 : i32
    %c0_i32_1 = arith.constant 0 : i32
    return %c0_i32, %c0_i32_0 : i32, i32
  }
  func.func @transform_3(%arg0: i32, %arg1: i32) -> (i32, i32, i32, i32, i32) {
    %c0_i32 = arith.constant 0 : i32
    %c0_i32_0 = arith.constant 0 : i32
    %c0_i32_1 = arith.constant 0 : i32
    %c0_i32_2 = arith.constant 0 : i32
    return %arg0, %arg1, %c0_i32, %c0_i32_0, %c0_i32_1 : i32, i32, i32, i32, i32
  }
}

</mosaic_0001>

<bundles_post_ra>
// kernel: tpu_custom_call.1
= control target key start
LH: loop header
LB: loop body
LE: loop exit
PB: predicated region body
PF: predicated region fallthrough
CT: control target
= control target key end

     0   :  { %8 = vsyncpa [#allocation3], 0  ;;  %s1455_s0 = inlined_call_operand.hbm [shape: f32[2,8,8,128], index: 0, kind: input, shape index: {}]   ;;  %s1456_s1 = inlined_call_operand.hbm [shape: bf16[2,128,256], index: 1, kind: input, shape index: {}]   ;;  %s1457_s2 = inlined_call_operand.hbm [shape: f32[1,256], index: 2, kind: input, shape index: {}]   ;;  %s1458_s3 = inlined_call_operand.hbm [shape: f32[2,8,2,8,256], index: 3, kind: output, shape index: {}]  }
   0x1   :  { %10 = vsyncpa [#allocation3 + $0x1], 0 }
   0x2   :  { %11 = vsyncpa [#allocation6], 0 }
   0x3   :  { %12 = vsyncpa [#allocation4], 0 }
   0x4   :  { %14 = vsyncpa [#allocation4 + $0x1], 0  ;;  %s1221_s12 = smov 0   ;;  %s1223_s13 = smov 0  }
   0x5   :  { %s1225_s14 = smov 0   ;;  %s1227_s15 = smov 0  }
   0x6   :  { %s1229_s16 = smov 0   ;;  %s1231_s17 = smov 0  }
   0x7 LB: > { %s733_s18 = sadd.s32 4294967295, %s1193_s17   ;;  %s734_s19 = sadd.s32 4294967294, %s1193_s17   ;;  %s1193_s17 = sphi %s1231_s17, %s20_s17   ;;  %s1189_s16 = sphi %s1229_s16, %s1468_s16   ;;  %s1185_s15 = sphi %s1227_s15, %s1467_s15   ;;  %s1181_s14 = sphi %s1225_s14, %s1466_s14   ;;  %s1177_s13 = sphi %s1223_s13, %s1465_s13   ;;  %s1173_s12 = sphi %s1221_s12, %s1464_s12  }
   0x8   : > { %p54_p0 = scmp.ne.s32.totalorder %s1177_s13, %s1173_s12  ;;  %p1255_p1 = scmp.eq.s32.totalorder %s733_s18, 0 }
   0x9   : > { %p128_p2 = scmp.eq.s32.totalorder %s734_s19, 1  ;;  %p735_p4 = scmp.ge.s32.totalorder %s1193_s17, 1 }
   0xa   : > { %p1261_p3 = por %p1255_p1, %p54_p0  ;;  %p135_p6 = scmp.lt.s32.totalorder %s1193_s17, 3 }
   0xb   : > { %p1266_p5 = por %p128_p2, %p54_p0  ;;  %s146_s25 = sshll.u32 %s1456_s1, 4  ;;  %s147_s25 = int_to_ptr.hbm [resolvable:$true] %s146_s25 }
   0xc   : > { %p1274_p7 = pnand %p735_p4, %p135_p6  ;;  %s1195_s27 = smov [#allocation5]  }
   0xd   : > { %s148_s28 = sshll.u32 %s1195_s27, 4  ;;  %p738_p10 = scmp.ge.s32.totalorder %s1193_s17, 2  ;;  %s149_s28 = int_to_ptr.vmem [resolvable:$true] %s148_s28 }
   0xe   : > { %p942_p8 = pneg %p1274_p7  ;;  %s161_s4 = sshll.u32 %s1457_s2, 4  ;;  %s162_s4 = int_to_ptr.hbm [resolvable:$true] %s161_s4 }
   0xf   : > { %s1196_s5 = smov 128   ;;  %s1197_s6 = smov 8  }
  0x10   : > { %p943_p9 = pnand %p942_p8, %p1255_p1  ;;  %s1198_s7 = smov [#allocation7]  }
  0x11   : > { %s163_s8 = sshll.u32 %s1198_s7, 4  ;;  %p122_p11 = scmp.eq.s32.totalorder %s733_s18, 1  ;;  %s164_s8 = int_to_ptr.vmem [resolvable:$true] %s163_s8 }
  0x12   : > { %945 = dma.hbm_to_vmem [thread:$0]  (!%p943_p9), %s147_s25, 4096, %s149_s28, [#allocation6], %s1196_s5, %s1196_s5, %s1197_s6  }
  0x13   : > { %948 = dma.hbm_to_vmem [thread:$0]  (!%p943_p9), %s162_s4, 32, %s164_s8, [#allocation6]  }
  0x14   : > { %s32_s9 = sadd.s32 1, %s1189_s16  ;;  %s41_s10 = sadd.s32 1, %s1181_s14 }
  0x15   : > { %p34_p12 = scmp.ge.s32.totalorder %s32_s9, 2  ;;  %p48_p13 = scmp.ne.s32.totalorder %s1181_s14, %s1177_s13 }
  0x16   : > { %p49_p0 = scmp.eq.s32.totalorder %s1193_s17, 0  ;;  %p959_p4 = scmp.lt.s32.totalorder %s1193_s17, 2 }
  0x17   : > { %s1470_s9 = smov (%p34_p12, %s32_s9), 0  ;;  %p1296_p2 = por %p122_p11, %p48_p13 }
  0x18   : > { %s36_s19 = ssub.s32 %s1189_s16, %s1470_s9  ;;  %s174_s23 = sand.u32 1, %s1181_s14  }
  0x19   : > { %p39_p6 = scmp.eq.s32.totalorder %s36_s19, 0  ;;  %p50_p8 = por %p49_p0, %p48_p13 }
  0x1a   : > { %s739_s24 = sshll.u32 %s174_s23, 6  ;;  %s896_s18 = sshll.u32 %s1189_s16, 6 }
  0x1b   : > { %s1306_s25 = scalar_select %p39_p6, %s1181_s14, %s41_s10  }
  0x1c   : > { %s185_s29 = scalar_lea.hbm %s1455_s0, %s896_s18  ;;  %s178_s4 = scalar_lea.vmem [#allocation2], %s739_s24 }
  0x1d   : > { %s186_s30 = sshll.u32 %s185_s29, 4  ;;  %s188_s7 = sshll.u32 %s178_s4, 4  ;;  %s187_s30 = int_to_ptr.hbm [resolvable:$true] %s186_s30  ;;  %s189_s7 = int_to_ptr.vmem [resolvable:$true] %s188_s7 }
  0x1e   : > { %p950_p9 = pnand %p959_p4, %p50_p8  ;;  %s175_s8 = scalar_lea.sflag [#allocation3], %s174_s23 }
  0x1f   : > { %200 = sbr.rel (%p1274_p7) target bundleno = 270 (0x10e), region = 32  ;;  %s1319_s10 = sand.u32 (!%p1274_p7), 1, %s1177_s13  }
  0x20   : > { %952 = dma.hbm_to_vmem [thread:$0]  (!%p950_p9), %s187_s30, 1024, %s189_s7, %s175_s8, %s1196_s5, %s1196_s5, %s1197_s6  }
  0x21   : > { %s743_s19 = sshll.u32 (!%p1274_p7), %s1319_s10, 6  ;;  %s203_s24 = scalar_lea.sflag (!%p1274_p7), [#allocation3], %s1319_s10 }
  0x22   : > { %s1323_s18 = scalar_lea.vmem (!%p1274_p7), [#allocation2], %s743_s19 }
  0x24   : > { %1160 = dma.done.wait (%p1261_p3), %s203_s24, 1024  }
  0x25   : > { %1162 = vsyncadd (%p1261_p3), %s203_s24, 4294966272 }
  0x26   : > { %1164 = dma.done.wait (%p1255_p1), [#allocation6], 4128  }
  0x27   : > { %1166 = vsyncadd (%p1255_p1), [#allocation6], 4294963168  ;;  %v805_v0 = vld [vmem:[#allocation5 + $0x70] sm:$0xf]  ;;  %v912_v1 = vld [vmem:[#allocation5 + $0x74] sm:$0xf0] }
  0x28   : > { %v911_v2 = vld [vmem:[#allocation5 + $0x74] sm:$0xf]  ;;  %v806_v3 = vor.u32 %v912_v1, %v805_v0  ;;  %v807_v4 = vld [vmem:[#allocation5 + $0x78] sm:$0xf0]  ;;  %v869_v5 = vld [vmem:[#allocation5 + $0xf0] sm:$0xf] }
  0x29   : > { %v928_v6 = vld [vmem:[#allocation5 + $0xf4] sm:$0xf0]  ;;  %v810_v7 = vor.u32 %v911_v2, %v807_v4  ;;  %v927_v9 = vld [vmem:[#allocation5 + $0xf4] sm:$0xf]  ;;  %v871_v10 = vld [vmem:[#allocation5 + $0xf8] sm:$0xf0] }
  0x2a   : > { %v870_v8 = vor.u32 %v928_v6, %v869_v5  ;;  %v797_v11 = vld [vmem:[#allocation5 + $0x60] sm:$0xf]  ;;  %356 = vmatpush.bf16.msra.mxu0 %v806_v3  ;;  %v874_v12 = vor.u32 %v927_v9, %v871_v10  ;;  %v910_v13 = vld [vmem:[#allocation5 + $0x64] sm:$0xf0]  ;;  %v909_v14 = vld [vmem:[#allocation5 + $0x64] sm:$0xf] }
  0x2b   : > { %v799_v15 = vld [vmem:[#allocation5 + $0x68] sm:$0xf0]  ;;  %385 = vmatpush.bf16.msra.mxu1 %v810_v7  ;;  %v798_v16 = vor.u32 %v910_v13, %v797_v11  ;;  %v861_v18 = vld [vmem:[#allocation5 + $0xe0] sm:$0xf]  ;;  %v926_v19 = vld [vmem:[#allocation5 + $0xe4] sm:$0xf0] }
  0x2c   : > { %533 = vmatpush.bf16.msra.mxu2 %v870_v8  ;;  %v802_v17 = vor.u32 %v909_v14, %v799_v15  ;;  %v925_v20 = vld [vmem:[#allocation5 + $0xe4] sm:$0xf]  ;;  %562 = vmatpush.bf16.msra.mxu3 %v874_v12  ;;  %v862_v21 = vor.u32 %v926_v19, %v861_v18  ;;  %v863_v22 = vld [vmem:[#allocation5 + $0xe8] sm:$0xf0]  ;;  %v789_v23 = vld [vmem:[#allocation5 + $0x50] sm:$0xf] }
  0x2d   : > { %v908_v24 = vld [vmem:[#allocation5 + $0x54] sm:$0xf0]  ;;  %v866_v25 = vor.u32 %v925_v20, %v863_v22  ;;  %v907_v26 = vld [vmem:[#allocation5 + $0x54] sm:$0xf]  ;;  %v791_v27 = vld [vmem:[#allocation5 + $0x58] sm:$0xf0] }
  0x2e   : > { %v853_v28 = vld [vmem:[#allocation5 + $0xd0] sm:$0xf]  ;;  %357 = vmatpush.bf16.msra.mxu0 %v798_v16  ;;  %v790_v29 = vor.u32 %v908_v24, %v789_v23  ;;  %v924_v30 = vld [vmem:[#allocation5 + $0xd4] sm:$0xf0]  ;;  %v923_v31 = vld [vmem:[#allocation5 + $0xd4] sm:$0xf]  ;;  %v794_v33 = vor.u32 %v907_v26, %v791_v27 }
  0x2f   : > { %v855_v32 = vld [vmem:[#allocation5 + $0xd8] sm:$0xf0]  ;;  %386 = vmatpush.bf16.msra.mxu1 %v802_v17  ;;  %v854_v34 = vor.u32 %v924_v30, %v853_v28  ;;  %v781_v35 = vld [vmem:[#allocation5 + $0x40] sm:$0xf]  ;;  %v906_v36 = vld [vmem:[#allocation5 + $0x44] sm:$0xf0] }
  0x30   : > { %534 = vmatpush.bf16.msra.mxu2 %v862_v21  ;;  %v905_v37 = vld [vmem:[#allocation5 + $0x44] sm:$0xf]  ;;  %563 = vmatpush.bf16.msra.mxu3 %v866_v25  ;;  %v858_v38 = vor.u32 %v923_v31, %v855_v32  ;;  %v783_v39 = vld [vmem:[#allocation5 + $0x48] sm:$0xf0]  ;;  %v845_v40 = vld [vmem:[#allocation5 + $0xc0] sm:$0xf]  ;;  %v782_v44 = vor.u32 %v906_v36, %v781_v35 }
  0x31   : > { %v922_v41 = vld [vmem:[#allocation5 + $0xc4] sm:$0xf0]  ;;  %v921_v42 = vld [vmem:[#allocation5 + $0xc4] sm:$0xf]  ;;  %v847_v43 = vld [vmem:[#allocation5 + $0xc8] sm:$0xf0]  ;;  %v786_v45 = vor.u32 %v905_v37, %v783_v39 }
  0x32   : > { %358 = vmatpush.bf16.msra.mxu0 %v790_v29  ;;  %v846_v46 = vor.u32 %v922_v41, %v845_v40  ;;  %v773_v47 = vld [vmem:[#allocation5 + $0x30] sm:$0xf]  ;;  %v904_v48 = vld [vmem:[#allocation5 + $0x34] sm:$0xf0]  ;;  %v903_v49 = vld [vmem:[#allocation5 + $0x34] sm:$0xf]  ;;  %v850_v50 = vor.u32 %v921_v42, %v847_v43 }
  0x33   : > { %387 = vmatpush.bf16.msra.mxu1 %v794_v33  ;;  %v775_v51 = vld [vmem:[#allocation5 + $0x38] sm:$0xf0]  ;;  %v837_v52 = vld [vmem:[#allocation5 + $0xb0] sm:$0xf]  ;;  %v920_v53 = vld [vmem:[#allocation5 + $0xb4] sm:$0xf0]  ;;  %v774_v56 = vor.u32 %v904_v48, %v773_v47 }
  0x34   : > { %535 = vmatpush.bf16.msra.mxu2 %v854_v34  ;;  %564 = vmatpush.bf16.msra.mxu3 %v858_v38  ;;  %v919_v54 = vld [vmem:[#allocation5 + $0xb4] sm:$0xf]  ;;  %v839_v55 = vld [vmem:[#allocation5 + $0xb8] sm:$0xf0]  ;;  %v778_v57 = vor.u32 %v903_v49, %v775_v51  ;;  %v838_v58 = vor.u32 %v920_v53, %v837_v52  ;;  %v765_v59 = vld [vmem:[#allocation5 + $0x20] sm:$0xf] }
  0x35   : > { %v902_v60 = vld [vmem:[#allocation5 + $0x24] sm:$0xf0]  ;;  %v901_v61 = vld [vmem:[#allocation5 + $0x24] sm:$0xf]  ;;  %v842_v62 = vor.u32 %v919_v54, %v839_v55  ;;  %v767_v63 = vld [vmem:[#allocation5 + $0x28] sm:$0xf0] }
  0x36   : > { %359 = vmatpush.bf16.msra.mxu0 %v782_v44  ;;  %v829_v0 = vld [vmem:[#allocation5 + $0xa0] sm:$0xf]  ;;  %v918_v1 = vld [vmem:[#allocation5 + $0xa4] sm:$0xf0]  ;;  %v917_v2 = vld [vmem:[#allocation5 + $0xa4] sm:$0xf]  ;;  %v766_v4 = vor.u32 %v902_v60, %v765_v59  ;;  %v770_v5 = vor.u32 %v901_v61, %v767_v63 }
  0x37   : > { %388 = vmatpush.bf16.msra.mxu1 %v786_v45  ;;  %v831_v3 = vld [vmem:[#allocation5 + $0xa8] sm:$0xf0]  ;;  %v830_v6 = vor.u32 %v918_v1, %v829_v0  ;;  %v757_v7 = vld [vmem:[#allocation5 + $0x10] sm:$0xf]  ;;  %v900_v8 = vld [vmem:[#allocation5 + $0x14] sm:$0xf0] }
  0x38   : > { %536 = vmatpush.bf16.msra.mxu2 %v846_v46  ;;  %565 = vmatpush.bf16.msra.mxu3 %v850_v50  ;;  %v899_v9 = vld [vmem:[#allocation5 + $0x14] sm:$0xf]  ;;  %v834_v10 = vor.u32 %v917_v2, %v831_v3  ;;  %v759_v11 = vld [vmem:[#allocation5 + $0x18] sm:$0xf0]  ;;  %v821_v12 = vld [vmem:[#allocation5 + $0x90] sm:$0xf]  ;;  %v758_v16 = vor.u32 %v900_v8, %v757_v7 }
  0x39   : > { %v916_v13 = vld [vmem:[#allocation5 + $0x94] sm:$0xf0]  ;;  %v915_v14 = vld [vmem:[#allocation5 + $0x94] sm:$0xf]  ;;  %v823_v15 = vld [vmem:[#allocation5 + $0x98] sm:$0xf0]  ;;  %v762_v17 = vor.u32 %v899_v9, %v759_v11 }
  0x3a   : > { %360 = vmatpush.bf16.msra.mxu0 %v774_v56  ;;  %v822_v18 = vor.u32 %v916_v13, %v821_v12  ;;  %v749_v19 = vld [vmem:[#allocation5] sm:$0xf]  ;;  %v898_v20 = vld [vmem:[#allocation5 + $0x4] sm:$0xf0]  ;;  %v897_v21 = vld [vmem:[#allocation5 + $0x4] sm:$0xf]  ;;  %v826_v22 = vor.u32 %v915_v14, %v823_v15 }
  0x3b   : > { %389 = vmatpush.bf16.msra.mxu1 %v778_v57  ;;  %v751_v23 = vld [vmem:[#allocation5 + $0x8] sm:$0xf0]  ;;  %v813_v24 = vld [vmem:[#allocation5 + $0x80] sm:$0xf]  ;;  %v914_v25 = vld [vmem:[#allocation5 + $0x84] sm:$0xf0]  ;;  %v750_v28 = vor.u32 %v898_v20, %v749_v19 }
  0x3c   : > { %537 = vmatpush.bf16.msra.mxu2 %v838_v58  ;;  %566 = vmatpush.bf16.msra.mxu3 %v842_v62  ;;  %v913_v26 = vld [vmem:[#allocation5 + $0x84] sm:$0xf]  ;;  %v815_v27 = vld [vmem:[#allocation5 + $0x88] sm:$0xf0]  ;;  %v754_v31 = vor.u32 %v897_v21, %v751_v23  ;;  %v814_v32 = vor.u32 %v914_v25, %v813_v24  ;;  %v244_v35 = vld [vmem:[%s1323_s18 + $0x10] sm:$0xff]  ;;  %s746_s20 = sshll.u32 %s1319_s10, 8 }
  0x3d   : > { %v242_v29 = vld [vmem:[%s1323_s18] sm:$0xff]  ;;  %v243_v30 = vld [vmem:[%s1323_s18 + $0x8] sm:$0xff]  ;;  %v818_v33 = vor.u32 %v913_v26, %v815_v27  ;;  %v245_v36 = vld [vmem:[%s1323_s18 + $0x18] sm:$0xff]  ;;  %s1348_s21 = scalar_lea.vmem [#allocation8], %s746_s20  ;;  %s929_s26 = sshll.u32 %s1185_s15, 8 }
  0x3e   : > { %361 = vmatpush.bf16.msra.mxu0 %v766_v4  ;;  %v250_v34 = vpack.c.bf16 %v243_v30, %v242_v29  ;;  %v251_v37 = vpack.c.bf16 %v245_v36, %v244_v35  ;;  %v246_v38 = vld [vmem:[%s1323_s18 + $0x20] sm:$0xff]  ;;  %v247_v39 = vld [vmem:[%s1323_s18 + $0x28] sm:$0xff]  ;;  %v248_v41 = vld [vmem:[%s1323_s18 + $0x30] sm:$0xff]  ;;  %s623_s23 = scalar_lea.hbm %s1458_s3, %s929_s26  ;;  %s624_s15 = sshll.u32 %s1348_s21, 4  ;;  %s625_s15 = int_to_ptr.vmem [resolvable:$true] %s624_s15 }
  0x3f   : > { %390 = vmatpush.bf16.msra.mxu1 %v770_v5  ;;  %v252_v40 = vpack.c.bf16 %v247_v39, %v246_v38  ;;  %v249_v42 = vld [vmem:[%s1323_s18 + $0x38] sm:$0xff]  ;;  %v270_v44 = vld [vmem:[#allocation7] sm:$0x3]  ;;  %s626_s27 = sshll.u32 %s623_s23, 4  ;;  %s609_s28 = scalar_lea.sflag [#allocation4], %s1319_s10  ;;  %s627_s27 = int_to_ptr.hbm [resolvable:$true] %s626_s27 }
  0x40   : > { %538 = vmatpush.bf16.msra.mxu2 %v830_v6  ;;  %567 = vmatpush.bf16.msra.mxu3 %v834_v10  ;;  %v253_v43 = vpack.c.bf16 %v249_v42, %v248_v41  ;;  %v1342_v45 = vperm.slane %v270_v44, 0  ;;  %v1344_v46 = vperm.slane %v270_v44, 1  ;;  %v447_v50 = vld [vmem:[#allocation7] sm:$0x3]  ;;  %s1121_s29 = sshra.s32 %s627_s27, 4  ;;  %s1127_s8 = scalar_lea.hbm %s1458_s3, 512  ;;  %s1122_s29 = int_to_ptr.hbm [resolvable:$true] %s1121_s29 }
  0x41   : > { %v1352_v52 = vperm.slane %v447_v50, 0  ;;  %v1354_v53 = vperm.slane %v447_v50, 1  ;;  %s1123_s30 = scalar_lea.hbm %s1122_s29, 256  ;;  %p1128_p11 = scmp.lt.s32.totalorder %s1122_s29, %s1458_s3 }
  0x42   : > { %362 = vmatpush.bf16.msra.mxu0 %v758_v16  ;;  %p1124_p1 = scmp.ne.s32.totalorder %s1122_s29, %s1123_s30  ;;  %p1129_p12 = scmp.lt.s32.totalorder %s1127_s8, %s1123_s30 }
  0x43   : > { %391 = vmatpush.bf16.msra.mxu1 %v762_v17 }
  0x44   : > { %539 = vmatpush.bf16.msra.mxu2 %v822_v18  ;;  %568 = vmatpush.bf16.msra.mxu3 %v826_v22  ;;  %p1125_p3 = pnand %p1124_p1, %p1296_p2  ;;  %p1130_p13 = por %p1129_p12, %p1128_p11 }
  0x46   : > { %363 = vmatpush.bf16.msra.mxu0 %v750_v28  ;;  %p1126_p7 = pneg %p1125_p3 }
  0x47   : > { %392 = vmatpush.bf16.msra.mxu1 %v754_v31 }
  0x48   : > { %540 = vmatpush.bf16.msra.mxu2 %v814_v32  ;;  %569 = vmatpush.bf16.msra.mxu3 %v818_v33  ;;  %p1131_p0 = pnand %p1130_p13, %p1126_p7 }
  0x49   : > { %364 = vmatmul.bf16.vlgmr.msra.gmra.mxu0 %v250_v34 }
  0x4a   : > { %393 = vmatmul.bf16.vlgmr.msra.gmra.mxu1 %v250_v34 }
  0x4b   : > { %541 = vmatmul.bf16.vlgmr.msra.gmra.mxu2 %v250_v34  ;;  %570 = vmatmul.bf16.vlgmr.msra.gmra.mxu3 %v250_v34 }
  0x59   : > { %369 = vmatmul.bf16.gmra.mxu0 %v251_v37 }
  0x5a   : > { %398 = vmatmul.bf16.gmra.mxu1 %v251_v37 }
  0x5b   : > { %546 = vmatmul.bf16.gmra.mxu2 %v251_v37  ;;  %575 = vmatmul.bf16.gmra.mxu3 %v251_v37 }
  0x69   : > { %374 = vmatmul.bf16.gmra.mxu0 %v252_v40 }
  0x6a   : > { %403 = vmatmul.bf16.gmra.mxu1 %v252_v40 }
  0x6b   : > { %551 = vmatmul.bf16.gmra.mxu2 %v252_v40  ;;  %580 = vmatmul.bf16.gmra.mxu3 %v252_v40 }
  0x79   : > { %379 = vmatmul.bf16.gmra.mxu0 %v253_v43 }
  0x7a   : > { %408 = vmatmul.bf16.gmra.mxu1 %v253_v43 }
  0x7b   : > { %556 = vmatmul.bf16.gmra.mxu2 %v253_v43  ;;  %585 = vmatmul.bf16.gmra.mxu3 %v253_v43 }
  0xc6   : > { %v365_v47 = vpop.f32.mrf.mxu0 }
  0xc7   : > { %v366_v48 = vadd.f32 %v365_v47, %v1342_v45  ;;  %v394_v49 = vpop.f32.mrf.mxu1 }
  0xc8   : > { %v395_v51 = vadd.f32 %v394_v49, %v1344_v46 }
  0xc9   : > { %414 = vst [vmem:[%s1348_s21] sm:$0xff] %v366_v48 }
  0xca   : > { %415 = vst [vmem:[%s1348_s21 + $0x8] sm:$0xff] %v395_v51 }
  0xce   : > { %v542_v54 = vpop.f32.mrf.mxu2  ;;  %v571_v56 = vpop.f32.mrf.mxu3 }
  0xcf   : > { %v543_v55 = vadd.f32 %v542_v54, %v1352_v52  ;;  %v367_v57 = vpop.f32.mrf.mxu0  ;;  %v572_v58 = vadd.f32 %v571_v56, %v1354_v53  ;;  %v396_v60 = vpop.f32.mrf.mxu1 }
  0xd0   : > { %v368_v59 = vadd.f32 %v367_v57, %v1342_v45  ;;  %v397_v61 = vadd.f32 %v396_v60, %v1344_v46 }
  0xd1   : > { %875 = vst [vmem:[%s1348_s21 + $0x10] sm:$0xff] %v543_v55 }
  0xd2   : > { %876 = vst [vmem:[%s1348_s21 + $0x18] sm:$0xff] %v572_v58 }
  0xd3   : > { %416 = vst [vmem:[%s1348_s21 + $0x20] sm:$0xff] %v368_v59 }
  0xd4   : > { %417 = vst [vmem:[%s1348_s21 + $0x28] sm:$0xff] %v397_v61 }
  0xd6   : > { %v544_v62 = vpop.f32.mrf.mxu2  ;;  %v573_v0 = vpop.f32.mrf.mxu3 }
  0xd7   : > { %v545_v63 = vadd.f32 %v544_v62, %v1352_v52  ;;  %v370_v1 = vpop.f32.mrf.mxu0  ;;  %v574_v2 = vadd.f32 %v573_v0, %v1354_v53  ;;  %v399_v4 = vpop.f32.mrf.mxu1 }
  0xd8   : > { %v371_v3 = vadd.f32 %v370_v1, %v1342_v45  ;;  %v400_v5 = vadd.f32 %v399_v4, %v1344_v46 }
  0xd9   : > { %877 = vst [vmem:[%s1348_s21 + $0x30] sm:$0xff] %v545_v63 }
  0xda   : > { %878 = vst [vmem:[%s1348_s21 + $0x38] sm:$0xff] %v574_v2 }
  0xdb   : > { %418 = vst [vmem:[%s1348_s21 + $0x40] sm:$0xff] %v371_v3 }
  0xdc   : > { %419 = vst [vmem:[%s1348_s21 + $0x48] sm:$0xff] %v400_v5 }
  0xde   : > { %v547_v6 = vpop.f32.mrf.mxu2  ;;  %v576_v8 = vpop.f32.mrf.mxu3 }
  0xdf   : > { %v548_v7 = vadd.f32 %v547_v6, %v1352_v52  ;;  %v372_v9 = vpop.f32.mrf.mxu0  ;;  %v577_v10 = vadd.f32 %v576_v8, %v1354_v53  ;;  %v401_v12 = vpop.f32.mrf.mxu1 }
  0xe0   : > { %v373_v11 = vadd.f32 %v372_v9, %v1342_v45  ;;  %v402_v13 = vadd.f32 %v401_v12, %v1344_v46 }
  0xe1   : > { %879 = vst [vmem:[%s1348_s21 + $0x50] sm:$0xff] %v548_v7 }
  0xe2   : > { %880 = vst [vmem:[%s1348_s21 + $0x58] sm:$0xff] %v577_v10 }
  0xe3   : > { %420 = vst [vmem:[%s1348_s21 + $0x60] sm:$0xff] %v373_v11 }
  0xe4   : > { %421 = vst [vmem:[%s1348_s21 + $0x68] sm:$0xff] %v402_v13 }
  0xe6   : > { %v549_v14 = vpop.f32.mrf.mxu2  ;;  %v578_v16 = vpop.f32.mrf.mxu3 }
  0xe7   : > { %v550_v15 = vadd.f32 %v549_v14, %v1352_v52  ;;  %v375_v17 = vpop.f32.mrf.mxu0  ;;  %v579_v18 = vadd.f32 %v578_v16, %v1354_v53  ;;  %v404_v20 = vpop.f32.mrf.mxu1 }
  0xe8   : > { %v376_v19 = vadd.f32 %v375_v17, %v1342_v45  ;;  %v405_v21 = vadd.f32 %v404_v20, %v1344_v46 }
  0xe9   : > { %881 = vst [vmem:[%s1348_s21 + $0x70] sm:$0xff] %v550_v15 }
  0xea   : > { %882 = vst [vmem:[%s1348_s21 + $0x78] sm:$0xff] %v579_v18 }
  0xeb   : > { %422 = vst [vmem:[%s1348_s21 + $0x80] sm:$0xff] %v376_v19 }
  0xec   : > { %423 = vst [vmem:[%s1348_s21 + $0x88] sm:$0xff] %v405_v21 }
  0xee   : > { %v552_v22 = vpop.f32.mrf.mxu2  ;;  %v581_v24 = vpop.f32.mrf.mxu3 }
  0xef   : > { %v553_v23 = vadd.f32 %v552_v22, %v1352_v52  ;;  %v377_v25 = vpop.f32.mrf.mxu0  ;;  %v582_v26 = vadd.f32 %v581_v24, %v1354_v53  ;;  %v406_v28 = vpop.f32.mrf.mxu1 }
  0xf0   : > { %v378_v27 = vadd.f32 %v377_v25, %v1342_v45  ;;  %v407_v29 = vadd.f32 %v406_v28, %v1344_v46 }
  0xf1   : > { %883 = vst [vmem:[%s1348_s21 + $0x90] sm:$0xff] %v553_v23 }
  0xf2   : > { %884 = vst [vmem:[%s1348_s21 + $0x98] sm:$0xff] %v582_v26 }
  0xf3   : > { %424 = vst [vmem:[%s1348_s21 + $0xa0] sm:$0xff] %v378_v27 }
  0xf4   : > { %425 = vst [vmem:[%s1348_s21 + $0xa8] sm:$0xff] %v407_v29 }
  0xf6   : > { %v554_v30 = vpop.f32.mrf.mxu2  ;;  %v583_v32 = vpop.f32.mrf.mxu3 }
  0xf7   : > { %v555_v31 = vadd.f32 %v554_v30, %v1352_v52  ;;  %v380_v33 = vpop.f32.mrf.mxu0  ;;  %v584_v34 = vadd.f32 %v583_v32, %v1354_v53  ;;  %v409_v36 = vpop.f32.mrf.mxu1 }
  0xf8   : > { %v381_v35 = vadd.f32 %v380_v33, %v1342_v45  ;;  %v410_v37 = vadd.f32 %v409_v36, %v1344_v46 }
  0xf9   : > { %885 = vst [vmem:[%s1348_s21 + $0xb0] sm:$0xff] %v555_v31 }
  0xfa   : > { %886 = vst [vmem:[%s1348_s21 + $0xb8] sm:$0xff] %v584_v34 }
  0xfb   : > { %426 = vst [vmem:[%s1348_s21 + $0xc0] sm:$0xff] %v381_v35 }
  0xfc   : > { %427 = vst [vmem:[%s1348_s21 + $0xc8] sm:$0xff] %v410_v37 }
  0xfe   : > { %v557_v38 = vpop.f32.mrf.mxu2  ;;  %v586_v40 = vpop.f32.mrf.mxu3 }
  0xff   : > { %v558_v39 = vadd.f32 %v557_v38, %v1352_v52  ;;  %v382_v41 = vpop.f32.mrf.mxu0  ;;  %v587_v42 = vadd.f32 %v586_v40, %v1354_v53  ;;  %v411_v44 = vpop.f32.mrf.mxu1 }
 0x100   : > { %v383_v43 = vadd.f32 %v382_v41, %v1342_v45  ;;  %v412_v47 = vadd.f32 %v411_v44, %v1344_v46 }
 0x101   : > { %887 = vst [vmem:[%s1348_s21 + $0xd0] sm:$0xff] %v558_v39 }
 0x102   : > { %888 = vst [vmem:[%s1348_s21 + $0xd8] sm:$0xff] %v587_v42 }
 0x103   : > { %428 = vst [vmem:[%s1348_s21 + $0xe0] sm:$0xff] %v383_v43 }
 0x104   : > { %429 = vst [vmem:[%s1348_s21 + $0xe8] sm:$0xff] %v412_v47 }
 0x106   : > { %v559_v48 = vpop.f32.mrf.mxu2  ;;  %v588_v49 = vpop.f32.mrf.mxu3 }
 0x107   : > { %v560_v45 = vadd.f32 %v559_v48, %v1352_v52  ;;  %v589_v50 = vadd.f32 %v588_v49, %v1354_v53 }
 0x109   : > { %889 = vst [vmem:[%s1348_s21 + $0xf0] sm:$0xff] %v560_v45 }
 0x10a   : > { %890 = vst [vmem:[%s1348_s21 + $0xf8] sm:$0xff] %v589_v50 }
 0x10b   : > { %1134 = shalt.err (!%p1131_p0)
}
 0x10c   : > { %s1199_s10 = smov 256   ;;  %s1200_s18 = smov 16  }
 0x10d   : > { %940 = dma.vmem_to_hbm [thread:$0]  (%p1296_p2), %s625_s15, 4096, %s627_s27, %s609_s28, %s1199_s10, %s1199_s10, %s1200_s18  }
 0x10e PF: > { %s641_s20 = sand.u32 1, %s1173_s12   ;;  %p954_p4 = pnand %p738_p10, %p1266_p5 }
 0x10f   : > { %s642_s21 = scalar_lea.sflag [#allocation4], %s641_s20 }
 0x110   : > { %p955_p6 = pneg %p954_p4 }
 0x112   : > { %1168 = dma.done.wait (%p955_p6), %s642_s21, 4096  }
 0x113   : > { %1170 = vsyncadd (%p955_p6), %s642_s21, 4294963200  ;;  %s20_s17 = sadd.s32 1, %s1193_s17   ;;  %s1464_s12 = smov %s1177_s13 }
 0x114   : > { %p17_p8 = scmp.ge.s32.totalorder %s20_s17, 4   ;;  %s1465_s13 = smov %s1181_s14 }
 0x115   : > { %s1466_s14 = smov %s1306_s25  ;;  %s1467_s15 = smov %s1189_s16 }
 0x116   : > { %s1468_s16 = smov %s1470_s9  ;;  %19 = sbr.rel (!%p17_p8) target bundleno = 7 (0x7), region = 87 }
 0x11b   :  { %648 = vsyncpa [#allocation3], 1 }
 0x11c   :  { %650 = vsyncpa [#allocation3 + $0x1], 1 }
 0x11d   :  { %651 = vsyncpa [#allocation6], 1 }
 0x11e   :  { %652 = vsyncpa [#allocation4], 1 }
 0x11f   :  { %654 = vsyncpa [#allocation4 + $0x1], 1 }

</bundles_post_ra>
